<compile_context>
chip_gen: v7x
topology: tpu7x:2x2x1
jax: 0.10.0
libtpu: 0.0.40
codegen_flags: <defaults>
</compile_context>

<pallas_src>
import math

import jax
import jax.numpy as jnp
from jax.experimental import pallas as pl
from jax.experimental.pallas import tpu as pltpu


def _round_up(n, m):
    return ((n + m - 1) // m) * m


def _make_kernel(sqrt_dk, bt, s_pad, s_valid, d_in, dkp, dvp, scale_after_pv):
    """Kernel body: bt batch elements per grid step, padded seq length s_pad."""

    def kernel(x_ref, w_ref, b_ref, o_ref):
        # x_ref: (bt, s_pad, d_in)   unpadded feature dim
        # w_ref: (d_in, 2*dkp+dvp)   fused pre-transposed [Wq^T | Wk^T | Wv^T]
        # b_ref: (1, 2*dkp+dvp)      fused padded biases
        # o_ref: (bt, s_pad, dvp)    padded output tile
        x2 = x_ref[...].reshape(bt * s_pad, d_in)

        # Single fused projection matmul (wide N fills the MXU).
        qkv = (
            jnp.dot(x2, w_ref[...], preferred_element_type=jnp.float32)
            + b_ref[...]
        )
        # Static, 128-aligned column slices -> cheap.
        q3 = qkv[:, :dkp].reshape(bt, s_pad, dkp)
        k3 = qkv[:, dkp : 2 * dkp].reshape(bt, s_pad, dkp)
        v3 = qkv[:, 2 * dkp :].reshape(bt, s_pad, dvp)

        # scores = Q @ K^T per batch element; contract last dims directly so
        # no explicit K transpose is materialized.
        scores = jnp.einsum(
            "bqd,bkd->bqk", q3, k3, preferred_element_type=jnp.float32
        )

        # Mask padded key positions (only traced when s_pad > s_valid).
        if s_pad > s_valid:
            kidx = jax.lax.broadcasted_iota(jnp.int32, (bt, s_pad, s_pad), 2)
            scores = jnp.where(kidx < s_valid, scores, -1e30)

        # Numerically stable softmax; the reference's post-softmax division by
        # norm = 1/sqrt(dim_k) is folded into the per-row reciprocal.
        m = jnp.max(scores, axis=-1, keepdims=True)
        e = jnp.exp(scores - m)
        denom = jnp.sum(e, axis=-1, keepdims=True)
        inv = pl.reciprocal(denom, approx=False) * sqrt_dk  # (bt, s_pad, 1)

        if scale_after_pv:
            # Scale the (S, Dv) result instead of the (S, S) exp tensor.
            out = (
                jnp.einsum(
                    "bqk,bkv->bqv", e, v3, preferred_element_type=jnp.float32
                )
                * inv
            )
        else:
            out = jnp.einsum(
                "bqk,bkv->bqv", e * inv, v3, preferred_element_type=jnp.float32
            )
        o_ref[...] = out.astype(o_ref.dtype)

    return kernel


def prepare_attention_params(wq, bq, wk, bk, wv, bv):
    """One-time weight prep: transpose, pad N dims to 128, fuse into one slab.

    Weights are given in torch.nn.Linear layout (out_features, in_features).
    """
    Dk, D_in = wq.shape
    Dv = wv.shape[0]
    Dkp = _round_up(Dk, 128)
    Dvp = _round_up(Dv, 128)

    w_fused = jnp.concatenate(
        [
            jnp.pad(wq.T, ((0, 0), (0, Dkp - Dk))),
            jnp.pad(wk.T, ((0, 0), (0, Dkp - Dk))),
            jnp.pad(wv.T, ((0, 0), (0, Dvp - Dv))),
        ],
        axis=1,
    )  # (D_in, 2*Dkp + Dvp)
    b_fused = jnp.concatenate(
        [
            jnp.pad(bq, (0, Dkp - Dk)),
            jnp.pad(bk, (0, Dkp - Dk)),
            jnp.pad(bv, (0, Dvp - Dv)),
        ]
    ).reshape(1, -1)  # (1, 2*Dkp + Dvp)
    return (w_fused, b_fused, Dk, Dv, Dkp, Dvp, D_in)


def attention_pallas(x, params, dim_k):
    """x: (B, S, D_in) float32; params from prepare_attention_params().

    Returns (B, S, Dv) float32, matching the PyTorch module's forward.
    """
    w_fused, b_fused, Dk, Dv, Dkp, Dvp, D_in = params
    B, S, D_in_x = x.shape
    assert D_in_x == D_in
    sqrt_dk = math.sqrt(dim_k)
    Np = 2 * Dkp + Dvp

    # Pad S to a multiple of 8 so leading-dim reshapes are layout no-ops.
    S_pad = _round_up(S, 8)
    xp = x if S_pad == S else jnp.pad(x, ((0, 0), (0, S_pad - S), (0, 0)))

    # --- Generation-aware VMEM budget ---------------------------------------
    try:
        info = pltpu.get_tpu_info()
        vmem_cap = int(getattr(info, "vmem_capacity_bytes", 64 << 20))
    except Exception:  # pragma: no cover - conservative fallback
        vmem_cap = 64 << 20
    vmem_limit = int(min(vmem_cap * 3 // 4, 96 << 20))

    # f32 bytes resident per batch element per step (incl. double-buffered
    # x/out tiles and the qkv / scores / exp intermediates).
    weight_bytes = 2 * 4 * (D_in * Np + Np)  # fused weights+bias, 2 buffers
    per_b = 4 * (
        2 * S_pad * D_in      # x tile (double-buffered)
        + 2 * S_pad * Dvp     # out tile (double-buffered)
        + 2 * S_pad * Np      # qkv + q/k/v views
        + 2 * S_pad * S_pad   # scores + exp
        + S_pad * Dvp         # PV accumulator
    )
    bt = max(1, min(B, (vmem_limit - weight_bytes) // max(per_b, 1)))
    if B >= 2:
        # Keep >= 2 grid steps so the 'parallel' axis can shard across the two
        # TensorCores on v7x (no-op cost on v5e/v6e).
        bt = min(bt, max(1, B // 2))
    while B % bt != 0:
        bt -= 1

    grid = (B // bt,)
    scale_after_pv = S > Dv
    kernel = _make_kernel(sqrt_dk, bt, S_pad, S, D_in, Dkp, Dvp, scale_after_pv)

    out_padded = pl.pallas_call(
        kernel,
        out_shape=jax.ShapeDtypeStruct((B, S_pad, Dvp), jnp.float32),
        grid=grid,
        in_specs=[
            pl.BlockSpec((bt, S_pad, D_in), lambda b: (b, 0, 0)),  # x tile
            pl.BlockSpec((D_in, Np), lambda b: (0, 0)),            # fused W^T
            pl.BlockSpec((1, Np), lambda b: (0, 0)),               # fused bias
        ],
        out_specs=pl.BlockSpec((bt, S_pad, Dvp), lambda b: (b, 0, 0)),
        compiler_params=pltpu.CompilerParams(
            dimension_semantics=("parallel",),
            vmem_limit_bytes=vmem_limit,
        ),
    )(xp, w_fused, b_fused)

    return out_padded[:, :S, :Dv]


def attention_reference(x, wq, bq, wk, bk, wv, bv, dim_k):
    """Pure-JAX reference mirroring the PyTorch forward semantics."""
    norm = 1.0 / math.sqrt(dim_k)
    Q = jnp.einsum("bsd,kd->bsk", x, wq) + bq
    K = jnp.einsum("bsd,kd->bsk", x, wk) + bk
    V = jnp.einsum("bsd,vd->bsv", x, wv) + bv
    scores = jnp.einsum("bqk,bpk->bqp", Q, K)
    att = jax.nn.softmax(scores, axis=-1) / norm
    return jnp.einsum("bqp,bpv->bqv", att, V)


if __name__ == "__main__":
    # Small shapes consistent with the module: batch=2, seq=8, input_dim=32,
    # dim_k=16, dim_v=16.
    B, S, D_in, Dk, Dv = 2, 8, 32, 16, 16

    key = jax.random.PRNGKey(0)
    kx, kwq, kbq, kwk, kbk, kwv, kbv = jax.random.split(key, 7)

    x = jax.random.normal(kx, (B, S, D_in), dtype=jnp.float32)

    # Deterministic parameter init (uniform in +-1/sqrt(in), like nn.Linear).
    bound = 1.0 / math.sqrt(D_in)
    wq = jax.random.uniform(kwq, (Dk, D_in), jnp.float32, -bound, bound)
    bq = jax.random.uniform(kbq, (Dk,), jnp.float32, -bound, bound)
    wk = jax.random.uniform(kwk, (Dk, D_in), jnp.float32, -bound, bound)
    bk = jax.random.uniform(kbk, (Dk,), jnp.float32, -bound, bound)
    wv = jax.random.uniform(kwv, (Dv, D_in), jnp.float32, -bound, bound)
    bv = jax.random.uniform(kbv, (Dv,), jnp.float32, -bound, bound)

    # Weight prep is done once, outside the per-call hot path.
    params = prepare_attention_params(wq, bq, wk, bk, wv, bv)

    out = attention_pallas(x, params, Dk)
    out = jax.block_until_ready(out)

    ref = attention_reference(x, wq, bq, wk, bk, wv, bv, Dk)
    assert out.shape == (B, S, Dv)
    assert jnp.allclose(out, ref, atol=1e-5, rtol=1e-5), (
        f"max abs err = {jnp.max(jnp.abs(out - ref))}"
    )

    print("KERNEL_OK")
</pallas_src>

<mosaic_0001>
module attributes {stable_mosaic.version = 11 : i64} {
  func.func @kernel(%arg0: i32, %arg1: memref<1x8x32xf32, #tpu.memory_space<vmem>>, %arg2: memref<32x384xf32, #tpu.memory_space<vmem>>, %arg3: memref<1x384xf32, #tpu.memory_space<vmem>>, %arg4: memref<1x8x128xf32, #tpu.memory_space<vmem>>) attributes {dimension_semantics = [#tpu.dimension_semantics<parallel>], iteration_bounds = array<i64: 2>, scalar_prefetch = 0 : i64, scratch_operands = 0 : i64, tpu.core_type = #tpu.core_type<tc>, window_params = [{transform_indices = @transform_0, window_bounds = array<i64: 1, 8, 32>}, {pipeline_mode = #tpu.pipeline_mode<synchronous>, transform_indices = @transform_1, window_bounds = array<i64: 32, 384>}, {pipeline_mode = #tpu.pipeline_mode<synchronous>, transform_indices = @transform_2, window_bounds = array<i64: 1, 384>}, {transform_indices = @transform_3, window_bounds = array<i64: 1, 8, 128>}]} {
    %c0 = arith.constant 0 : index
    %c0_0 = arith.constant 0 : index
    %c0_1 = arith.constant 0 : index
    %0 = vector.load %arg1[%c0, %c0_0, %c0_1] : memref<1x8x32xf32, #tpu.memory_space<vmem>>, vector<1x8x32xf32>
    %1 = vector.shape_cast %0 : vector<1x8x32xf32> to vector<8x32xf32>
    %c0_2 = arith.constant 0 : index
    %c0_3 = arith.constant 0 : index
    %2 = vector.load %arg2[%c0_2, %c0_3] : memref<32x384xf32, #tpu.memory_space<vmem>>, vector<32x384xf32>
    %cst = arith.constant dense<0.000000e+00> : vector<8x384xf32>
    %3 = tpu.matmul %1, %2, %cst {dimension_numbers = #tpu.dot_dimension_numbers<[1], [0], [0], [1], [0, 0, 1, 1], [], []>} : vector<8x32xf32>, vector<32x384xf32>, vector<8x384xf32> -> vector<8x384xf32>
    %c0_4 = arith.constant 0 : index
    %c0_5 = arith.constant 0 : index
    %4 = vector.load %arg3[%c0_4, %c0_5] : memref<1x384xf32, #tpu.memory_space<vmem>>, vector<1x384xf32>
    %5 = vector.broadcast %4 : vector<1x384xf32> to vector<8x384xf32>
    %6 = arith.addf %3, %5 : vector<8x384xf32>
    %7 = vector.extract_strided_slice %6 {offsets = [0, 0], sizes = [8, 128], strides = [1, 1]} : vector<8x384xf32> to vector<8x128xf32>
    %8 = vector.shape_cast %7 : vector<8x128xf32> to vector<1x8x128xf32>
    %9 = vector.extract_strided_slice %6 {offsets = [0, 128], sizes = [8, 128], strides = [1, 1]} : vector<8x384xf32> to vector<8x128xf32>
    %10 = vector.shape_cast %9 : vector<8x128xf32> to vector<1x8x128xf32>
    %11 = vector.extract_strided_slice %6 {offsets = [0, 256], sizes = [8, 128], strides = [1, 1]} : vector<8x384xf32> to vector<8x128xf32>
    %12 = vector.shape_cast %11 : vector<8x128xf32> to vector<1x8x128xf32>
    "tpu.trace_start"() <{level = 10 : i32, message = "bqd,bkd->bqk"}> : () -> ()
    %cst_6 = arith.constant dense<0.000000e+00> : vector<1x8x8xf32>
    %13 = tpu.matmul %8, %10, %cst_6 {dimension_numbers = #tpu.dot_dimension_numbers<[2], [2], [1], [1], [0, 0, 0, 1, 1, 1], [0], [0]>} : vector<1x8x128xf32>, vector<1x8x128xf32>, vector<1x8x8xf32> -> vector<1x8x8xf32>
    "tpu.trace_stop"() : () -> ()
    %cst_7 = arith.constant dense<0xFF800000> : vector<1x8xf32>
    %14 = vector.multi_reduction <maximumf>, %13, %cst_7 [2] : vector<1x8x8xf32> to vector<1x8xf32>
    %15 = vector.shape_cast %14 : vector<1x8xf32> to vector<1x8x1xf32>
    %16 = vector.broadcast %15 : vector<1x8x1xf32> to vector<1x8x8xf32>
    %17 = arith.subf %13, %16 : vector<1x8x8xf32>
    %18 = math.exp %17 : vector<1x8x8xf32>
    %cst_8 = arith.constant dense<0.000000e+00> : vector<1x8xf32>
    %19 = vector.multi_reduction <add>, %18, %cst_8 [2] : vector<1x8x8xf32> to vector<1x8xf32>
    %20 = vector.shape_cast %19 : vector<1x8xf32> to vector<1x8x1xf32>
    %21 = tpu.reciprocal %20 : vector<1x8x1xf32> -> vector<1x8x1xf32>
    %cst_9 = arith.constant 4.000000e+00 : f32
    %22 = vector.broadcast %cst_9 : f32 to vector<1x8x1xf32>
    %23 = arith.mulf %21, %22 : vector<1x8x1xf32>
    %24 = vector.broadcast %23 : vector<1x8x1xf32> to vector<1x8x8xf32>
    %25 = arith.mulf %18, %24 : vector<1x8x8xf32>
    "tpu.trace_start"() <{level = 10 : i32, message = "bqk,bkv->bqv"}> : () -> ()
    %cst_10 = arith.constant dense<0.000000e+00> : vector<1x8x128xf32>
    %26 = tpu.matmul %25, %12, %cst_10 {dimension_numbers = #tpu.dot_dimension_numbers<[2], [1], [1], [2], [0, 0, 0, 1, 1, 2], [0], [0]>} : vector<1x8x8xf32>, vector<1x8x128xf32>, vector<1x8x128xf32> -> vector<1x8x128xf32>
    "tpu.trace_stop"() : () -> ()
    %c0_11 = arith.constant 0 : index
    %c0_12 = arith.constant 0 : index
    %c0_13 = arith.constant 0 : index
    %27 = vector.load %arg4[%c0_11, %c0_12, %c0_13] : memref<1x8x128xf32, #tpu.memory_space<vmem>>, vector<1x8x128xf32>
    tpu.vector_store %arg4[%c0_11, %c0_12, %c0_13], %26 {strides = array<i32>} : memref<1x8x128xf32, #tpu.memory_space<vmem>>, vector<1x8x128xf32>,
    return
  }
  func.func @transform_0(%arg0: i32) -> (i32, i32, i32) {
    %c0_i32 = arith.constant 0 : i32
    %c0_i32_0 = arith.constant 0 : i32
    %c0_i32_1 = arith.constant 0 : i32
    return %arg0, %c0_i32, %c0_i32_0 : i32, i32, i32
  }
  func.func @transform_1(%arg0: i32) -> (i32, i32) {
    %c0_i32 = arith.constant 0 : i32
    %c0_i32_0 = arith.constant 0 : i32
    %c0_i32_1 = arith.constant 0 : i32
    return %c0_i32, %c0_i32_0 : i32, i32
  }
  func.func @transform_2(%arg0: i32) -> (i32, i32) {
    %c0_i32 = arith.constant 0 : i32
    %c0_i32_0 = arith.constant 0 : i32
    %c0_i32_1 = arith.constant 0 : i32
    return %c0_i32, %c0_i32_0 : i32, i32
  }
  func.func @transform_3(%arg0: i32) -> (i32, i32, i32) {
    %c0_i32 = arith.constant 0 : i32
    %c0_i32_0 = arith.constant 0 : i32
    %c0_i32_1 = arith.constant 0 : i32
    return %arg0, %c0_i32, %c0_i32_0 : i32, i32, i32
  }
}

</mosaic_0001>

<bundles_post_ra>
// kernel: tpu_custom_call.1
= control target key start
LH: loop header
LB: loop body
LE: loop exit
PB: predicated region body
PF: predicated region fallthrough
CT: control target
= control target key end

     0   :  { %8 = vsyncpa [#allocation3], 0  ;;  %s1123_s0 = inlined_call_operand.hbm [shape: f32[2,8,32], index: 0, kind: input, shape index: {}]   ;;  %s1124_s1 = inlined_call_operand.hbm [shape: f32[32,384], index: 1, kind: input, shape index: {}]   ;;  %s1125_s2 = inlined_call_operand.vmem [shape: f32[1,384], index: 2, kind: input, shape index: {}]   ;;  %s1126_s3 = inlined_call_operand.hbm [shape: f32[2,8,128], index: 3, kind: output, shape index: {}]  }
   0x1   :  { %10 = vsyncpa [#allocation3 + $0x1], 0 }
   0x2   :  { %11 = vsyncpa [#allocation6], 0 }
   0x3   :  { %12 = vsyncpa [#allocation4], 0 }
   0x4   :  { %14 = vsyncpa [#allocation4 + $0x1], 0  ;;  %s912_s12 = smov 0   ;;  %s914_s13 = smov 0  }
   0x5   :  { %s916_s14 = smov 0   ;;  %s918_s15 = smov 0  }
   0x6 LB: > { %s933_s16 = sadd.s32 4294967295, %s882_s15   ;;  %s627_s17 = sadd.s32 4294967294, %s882_s15   ;;  %s882_s15 = sphi %s918_s15, %s1146_s15   ;;  %s878_s14 = sphi %s916_s14, %s1145_s14   ;;  %s874_s13 = sphi %s914_s13, %s1144_s13   ;;  %s870_s12 = sphi %s912_s12, %s1143_s12  }
   0x7   : > { %p40_p0 = scmp.ne.s32.totalorder %s874_s13, %s870_s12  ;;  %p1127_p1 = scmp.eq.s32.totalorder %s933_s16, 0 }
   0x8   : > { %p112_p3 = scmp.eq.s32.totalorder %s627_s17, 1  ;;  %p628_p5 = scmp.ge.s32.totalorder %s882_s15, 1 }
   0x9   : > { %p942_p4 = por %p1127_p1, %p40_p0  ;;  %p119_p7 = scmp.lt.s32.totalorder %s882_s15, 3 }
   0xa   : > { %p947_p6 = por %p112_p3, %p40_p0  ;;  %s884_s21 = smov [#allocation5]  }
   0xb   : > { %s1130_s18 = scalar_select %p942_p4, 1, 0 }
   0xc   : > { %s1131_s19 = scalar_select %p947_p6, 1, 0 }
   0xd   : > { %p952_p8 = pnand %p628_p5, %p119_p7  ;;  %s131_s22 = sshll.u32 %s884_s21, 4  ;;  %s956_s22 = int_to_ptr.vmem [resolvable:$true] %s131_s22 }
   0xe   : > { %s968_s24 = sadd.s32 1, %s882_s15   ;;  %s27_s25 = sadd.s32 1, %s878_s14 }
   0xf   : > { %s1132_s20 = scalar_select %p952_p8, 1, 0 }
  0x10   : > { %p696_p9 = pneg %p952_p8  ;;  %s24_s26 = ssub.s32 %s882_s15, %s968_s24 }
  0x11   : > { %s754_s29 = scalar_lea.hbm %s1124_s1, 1536 }
  0x12   : > { %p963_p11 = pnand %p696_p9, %p1127_p1  ;;  %p755_p12 = scmp.ne.s32.totalorder %s1124_s1, %s754_s29 }
  0x13   : > { %p761_p5 = scmp.lt.u32.totalorder %s754_s29, %s1124_s1 }
  0x14   : > { %p756_p13 = pneg %p963_p11 }
  0x16   : > { %p757_p0 = pnand %p756_p13, %p755_p12 }
  0x18   : > { %p758_p3 = pneg %p757_p0 }
  0x1a   : > { %p763_p7 = pnand %p761_p5, %p758_p3 }
  0x1c   : > { %766 = shalt.err (!%p763_p7)
}
  0x1d   : > { %s767_s7 = scalar_lea.vmem %s956_s22, 1536  ;;  %p775_p2 = scmp.lt.s32.totalorder %s956_s22, %s956_s22 }
  0x1e   : > { %p768_p9 = scmp.ne.s32.totalorder %s956_s22, %s767_s7  ;;  %p776_p6 = scmp.lt.s32.totalorder %s767_s7, %s767_s7 }
  0x20   : > { %p770_p10 = pnand %p768_p9, %p756_p13  ;;  %p777_p4 = por %p776_p6, %p775_p2 }
  0x22   : > { %p771_p1 = pneg %p770_p10 }
  0x24   : > { %p778_p8 = pnand %p777_p4, %p771_p1 }
  0x26   : > { %781 = shalt.err (!%p778_p8)
}
  0x27   : > { %s885_s8 = smov 384   ;;  %s886_s9 = smov 24  }
  0x28   : > { %699 = dma.hbm_to_vmem [thread:$0]  (!%p963_p11), %s1124_s1, 1536, %s956_s22, [#allocation6], %s885_s8, %s885_s8, %s886_s9  }
  0x29   : > { %p25_p2 = scmp.eq.s32.totalorder %s24_s26, 0  ;;  %p34_p1 = scmp.ne.s32.totalorder %s878_s14, %s874_s13 }
  0x2a   : > { %p35_p4 = scmp.eq.s32.totalorder %s882_s15, 0  ;;  %p709_p6 = scmp.lt.s32.totalorder %s882_s15, 2 }
  0x2b   : > { %s999_s17 = scalar_select %p25_p2, %s878_s14, %s27_s25  }
  0x2c   : > { %p36_p8 = por %p35_p4, %p34_p1  ;;  %p1134_p10 = scmp.eq.s32.totalorder %s933_s16, 1 }
  0x2d   : > { %s148_s27 = sand.u32 1, %s878_s14   ;;  %s632_s28 = sshll.u32 %s882_s15, 7 }
  0x2e   : > { %p1003_p12 = por %p1134_p10, %p34_p1  ;;  %s631_s29 = sshll.u32 %s148_s27, 3 }
  0x2f   : > { %s1012_s4 = scalar_lea.hbm %s1123_s0, %s632_s28  ;;  %s152_s22 = scalar_lea.vmem [#allocation2], %s631_s29 }
  0x30   : > { %s159_s25 = sshll.u32 %s152_s22, 4  ;;  %p1014_p11 = pnand %p709_p6, %p36_p8  ;;  %s1018_s25 = int_to_ptr.vmem [resolvable:$true] %s159_s25 }
  0x31   : > { %s149_s5 = scalar_lea.sflag [#allocation3], %s148_s27  ;;  %s782_s6 = scalar_lea.hbm %s1012_s4, 128 }
  0x32   : > { %p783_p13 = scmp.ne.s32.totalorder %s1012_s4, %s782_s6  ;;  %p784_p0 = pneg %p1014_p11 }
  0x33   : > { %s787_s9 = scalar_lea.hbm %s1123_s0, 256  ;;  %p788_p7 = scmp.lt.u32.totalorder %s1012_s4, %s1123_s0 }
  0x34   : > { %p785_p3 = pnand %p784_p0, %p783_p13  ;;  %p789_p9 = scmp.lt.u32.totalorder %s787_s9, %s782_s6 }
  0x35   : > { %p791_p1 = scmp.lt.u32.totalorder %s782_s6, %s1012_s4 }
  0x36   : > { %p786_p5 = pneg %p785_p3  ;;  %p790_p2 = por %p789_p9, %p788_p7 }
  0x38   : > { %p792_p4 = por %p791_p1, %p790_p2 }
  0x3a   : > { %p793_p6 = pnand %p792_p4, %p786_p5 }
  0x3c   : > { %796 = shalt.err (!%p793_p6)
}
  0x3d   : > { %s797_s27 = scalar_lea.vmem %s1018_s25, 128  ;;  %s887_s28 = smov [#allocation2]  }
  0x3e   : > { %p798_p8 = scmp.ne.s32.totalorder %s1018_s25, %s797_s27  ;;  %s802_s29 = sshll.u32 %s887_s28, 4  ;;  %s803_s29 = int_to_ptr.vmem [resolvable:$false] %s802_s29 }
  0x3f   : > { %s804_s23 = scalar_lea.vmem %s803_s29, 256  ;;  %p805_p3 = scmp.lt.s32.totalorder %s1018_s25, %s803_s29 }
  0x40   : > { %p800_p10 = pnand %p798_p8, %p784_p0  ;;  %p806_p7 = scmp.lt.s32.totalorder %s804_s23, %s797_s27 }
  0x42   : > { %p801_p13 = pneg %p800_p10  ;;  %p807_p9 = por %p806_p7, %p805_p3 }
  0x44   : > { %p808_p2 = pnand %p807_p9, %p801_p13 }
  0x46   : > { %811 = shalt.err (!%p808_p2)
}
  0x47   : > { %703 = dma.hbm_to_vmem [thread:$0]  (!%p1014_p11), %s1012_s4, 128, %s1018_s25, %s149_s5  }
  0x48   : > { %p1137_p5 = scmp.ne.s32.totalorder %s1132_s20, 0 }
  0x49   : > { %s1048_s30 = sand.u32 (!%p1137_p5), 1, %s874_s13   ;;  %p1138_p0 = scmp.ne.s32.totalorder (!%p1137_p5), %s1130_s18, 0 }
  0x4a   : > { %168 = sbr.rel (%p1137_p5) target bundleno = 1068 (0x42c), region = 32  ;;  %s634_s22 = sshll.u32 (!%p1137_p5), %s1048_s30, 3 }
  0x4b   : > { %s171_s6 = scalar_lea.sflag (!%p1137_p5), [#allocation3], %s1048_s30  ;;  %s174_s7 = scalar_lea.vmem (!%p1137_p5), [#allocation2], %s634_s22 }
  0x51   : > { %857 = dma.done.wait (%p1138_p0), %s171_s6, 128  }
  0x52   : > { %859 = vsyncadd (%p1138_p0), %s171_s6, 4294967168  ;;  %p1139_p11 = scmp.eq.s32.totalorder %s933_s16, 0 }
  0x54   : > { %861 = dma.done.wait (%p1139_p11), [#allocation6], 1536   ;;  %p1140_p1 = pmov %p1139_p11 }
  0x55   : > { %v888_v0 = vmov 0.0   ;;  %v203_v1 = vld [vmem:[#allocation5 + $0x8] sm:$0xff]  ;;  %v206_v2 = vld [vmem:[#allocation5 + $0x20] sm:$0xff]  ;;  %v205_v5 = vld [vmem:[#allocation5 + $0x18] sm:$0xff]  ;;  %vm231_vm0 = vcmask 261120   ;;  %vm889_vm1 = vmmov 0   ;;  %v216_v14 = vlaneseq }
  0x56   : > { %863 = vsyncadd (%p1140_p1), [#allocation6], 4294965760  ;;  %299 = vmatprep.mubr.f32.mxu0 %v888_v0  ;;  %v202_v3 = vld [vmem:[#allocation5] sm:$0xff]  ;;  %v674_v4 = vpack.c.bf16 %v206_v2, %v203_v1  ;;  %v209_v6 = vld [vmem:[#allocation5 + $0x38] sm:$0xff]  ;;  %661 = vmatprep.mubr.msk.f32.mxu1 %vm889_vm1, %v888_v0  ;;  %v890_v28 = vmov 0.0|0.0   ;;  %vm446_vm2 = vcmask 64512  }
  0x57   : > { %v212_v7 = vld [vmem:[#allocation5 + $0x50] sm:$0xff]  ;;  %v676_v8 = vpack.c.bf16 %v205_v5, %v202_v3  ;;  %v211_v11 = vld [vmem:[#allocation5 + $0x48] sm:$0xff]  ;;  %v217_v15 = vshrl.u32 %v216_v14, 7  ;;  %v210_v27 = vld [vmem:[#allocation5 + $0x40] sm:$0xff]  ;;  %682 = vmatprep.subr.bf16.mxu1 %v890_v28  ;;  %s200_s4 = scalar_lea.vmem [#allocation7], %s634_s22  ;;  %s641_s26 = sshll.u32 %s933_s16, 7 }
  0x58   : > { %v678_v9 = vpack.c.bf16 %v212_v7, %v209_v6  ;;  %v208_v10 = vld [vmem:[#allocation5 + $0x30] sm:$0xff]  ;;  %675 = vmatprep.subr.bf16.mxu0 %v674_v4  ;;  %v207_v26 = vld [vmem:[#allocation5 + $0x28] sm:$0xff]  ;;  %v213_v30 = vld [vmem:[#allocation5 + $0x58] sm:$0xff]  ;;  %s547_s25 = sshll.u32 %s200_s4, 4  ;;  %s1081_s9 = scalar_lea.hbm %s1126_s3, %s641_s26  ;;  %s1076_s25 = int_to_ptr.vmem [resolvable:$true] %s547_s25 }
  0x59   : > { %677 = vmatpush1.bf16.msra.mxu0 %v676_v8  ;;  %v680_v12 = vpack.c.bf16 %v211_v11, %v208_v10  ;;  %v201_v13 = vld [vmem:[%s174_s7] sm:$0xff]  ;;  %v222_v16 = vsub.s32 1, %v217_v15  ;;  %v218_v18 = vsub.s32 0, %v217_v15  ;;  %v686_v31 = vpack.c.bf16 %v213_v30, %v210_v27  ;;  %s534_s10 = scalar_lea.sflag [#allocation4], %s1048_s30  ;;  %s812_s11 = scalar_lea.vmem %s1076_s25, 128 }
  0x5a   : > { %679 = vmatprep.subr.bf16.mxu0 %v678_v9  ;;  %v214_v17 = vld [vmem:[%s1125_s2] sm:$0x7]  ;;  %v226_v40 = vsub.s32 2, %v217_v15  ;;  %p813_p4 = scmp.ne.s32.totalorder %s1076_s25, %s812_s11  ;;  %s891_s16 = smov [#allocation7]  }
  0x5b   : > { %v223_v19 = vrot.slane %v214_v17, %v222_v16  ;;  %v219_v21 = vrot.slane %v214_v17, %v218_v18  ;;  %v204_v25 = vld [vmem:[#allocation5 + $0x10] sm:$0xff]  ;;  %s816_s27 = sshll.u32 %s891_s16, 4  ;;  %s817_s27 = int_to_ptr.vmem [resolvable:$false] %s816_s27 }
  0x5c   : > { %v683_v29 = vpack.c.bf16 %v207_v26, %v204_v25  ;;  %v227_v41 = vrot.slane %v214_v17, %v226_v40  ;;  %p814_p6 = pnand %p813_p4, %p1003_p12  ;;  %s818_s28 = scalar_lea.vmem %s817_s27, 256 }
  0x5d   : > { %681 = vmatpush1.bf16.msra.mxu0 %v680_v12  ;;  %p819_p10 = scmp.lt.s32.totalorder %s1076_s25, %s817_s27  ;;  %p820_p13 = scmp.lt.s32.totalorder %s818_s28, %s812_s11 }
  0x5e   : > { %664 = vmatprep.subr.mxu0 %v888_v0  ;;  %684 = vmatpush3.bf16.msra.mxu1 %v683_v29  ;;  %p815_p8 = pneg %p814_p6 }
  0x5f   : > { %685 = vmatprep.subr.bf16.mxu1 %v890_v28  ;;  %p821_p3 = por %p820_p13, %p819_p10 }
  0x60   : > { %637 = vmatmul.mubr.msk.f32.vlgmr.msra.gmra.mrb[0].mxu0 %vm231_vm0, %v201_v13 }
  0x61   : > { %666 = vmatprep.mubr.msk.f32.mxu0 %vm889_vm1, %v888_v0  ;;  %p822_p7 = pnand %p821_p3, %p815_p8 }
  0x62   : > { %687 = vmatpush3.bf16.msra.mxu1 %v686_v31 }
  0x63   : > { %669 = vmatprep.subr.mxu1 %v888_v0 }
  0x65   : > { %662 = vmatmul.mubr.msk.f32.vlgmr.msra.gmra.mrb[0].mxu1 %vm231_vm0, %v201_v13 }
  0x66   : > { %671 = vmatprep.mubr.msk.f32.mxu1 %vm889_vm1, %v888_v0 }
 0x133   : > { %v301_v20 = vpop.f32.mrb[0].mxu0 }
 0x134   : > { %v303_v22 = vpop.f32.mrb[1].mxu0  ;;  %v302_v24 = vadd.f32 %v301_v20, %v219_v21 }
 0x135   : > { %v304_v23 = vadd.f32 %v303_v22, %v223_v19 }
 0x137   : > { %665 = vmatpush3.xpose.msra.mxu0 %v304_v23 }
 0x138   : > { %v372_v42 = vpop.f32.mrb[0].mxu1 }
 0x139   : > { %v663_v43 = vpop.f32.mrb[1].mxu1  ;;  %v373_v44 = vadd.f32 %v372_v42, %v227_v41 }
 0x13a   : > { %667 = vmatmul.mubr.f32.vlgmr.msra.gmra.mrb[2].mxu0 %v302_v24 }
 0x13b   : > { %670 = vmatpush3.msra.mxu1 %v373_v44 }
 0x20d   : > { %v442_v32 = vpop.f32.mrb[2].mxu0 }
 0x20e   : > { %v668_v33 = vpop.f32.mrb[3].mxu0  ;;  %v447_v34 = vsel %vm446_vm2, %v442_v32, -inf }
 0x20f   : > { %448 = vmax.xlane.f32.xlu0 %v447_v34 }
 0x29c   : > { %v449_v35 = vpop.xlane.xlu0 %448 }
 0x29d   : > { %v450_v36 = vsub.f32 %v442_v32, %v449_v35 }
 0x29f   : > { %v451_v37 = vmul.f32 1.442695, %v450_v36 }
 0x2a1   : > { %750 = vpow2.f32 %v451_v37 }
 0x2ab   : > { %v751_v38 = vpop.eup %750 }
 0x2ac   : > { %v453_v39 = vsel %vm446_vm2, %v751_v38, 0.0 }
 0x2ad   : > { %454 = vadd.xlane.f32.xlu0 %v453_v39 }
 0x33a   : > { %v455_v45 = vpop.xlane.xlu0 %454 }
 0x33b   : > { %752 = vrcp.f32 %v455_v45 }
 0x345   : > { %v753_v46 = vpop.eup %752 }
 0x346   : > { %v457_v47 = vmul.f32 4.0, %v753_v46 }
 0x348   : > { %v458_v48 = vmul.f32 %v751_v38, %v457_v47 }
 0x34a   : > { %672 = vmatmul.mubr.msk.f32.vlgmr.msra.gmra.mrb[2].mxu1 %vm446_vm2, %v458_v48 }
 0x41d   : > { %v528_v49 = vpop.f32.mrb[2].mxu1 }
 0x41e   : > { %532 = vst [vmem:[%s200_s4] sm:$0xff] %v528_v49  ;;  %v673_v50 = vpop.f32.mrb[3].mxu1 }
 0x41f   : > { %825 = shalt.err (!%p822_p7)
}
 0x420   : > { %s826_s29 = scalar_lea.hbm %s1081_s9, 128  ;;  %s830_s22 = scalar_lea.hbm %s1126_s3, 256 }
 0x421   : > { %p827_p9 = scmp.ne.s32.totalorder %s1081_s9, %s826_s29  ;;  %p831_p0 = scmp.lt.u32.totalorder %s1081_s9, %s1126_s3 }
 0x422   : > { %p832_p11 = scmp.lt.u32.totalorder %s830_s22, %s826_s29  ;;  %p834_p4 = scmp.lt.u32.totalorder %s826_s29, %s1081_s9 }
 0x423   : > { %p828_p2 = pnand %p827_p9, %p1003_p12 }
 0x424   : > { %p833_p1 = por %p832_p11, %p831_p0 }
 0x425   : > { %p829_p5 = pneg %p828_p2 }
 0x426   : > { %p835_p6 = por %p834_p4, %p833_p1 }
 0x428   : > { %p836_p8 = pnand %p835_p6, %p829_p5 }
 0x42a   : > { %839 = shalt.err (!%p836_p8)
}
 0x42b   : > { %694 = dma.vmem_to_hbm [thread:$0]  (%p1003_p12), %s1076_s25, 128, %s1081_s9, %s534_s10  }
 0x42c PF: > { %s559_s18 = sand.u32 1, %s870_s12   ;;  %p1141_p10 = scmp.ne.s32.totalorder %s1131_s19, 0 }
 0x42d   : > { %p1142_p13 = scmp.ge.s32.totalorder %s882_s15, 2  ;;  %s560_s20 = scalar_lea.sflag [#allocation4], %s559_s18 }
 0x42f   : > { %p705_p3 = pnand %p1142_p13, %p1141_p10 }
 0x431   : > { %865 = dma.done.wait (!%p705_p3), %s560_s20, 128  }
 0x432   : > { %867 = vsyncadd (!%p705_p3), %s560_s20, 4294967168  ;;  %p17_p7 = scmp.ge.s32.totalorder %s968_s24, 4   ;;  %s1143_s12 = smov %s874_s13 }
 0x433   : > { %s1144_s13 = smov %s878_s14  ;;  %s1145_s14 = smov %s999_s17 }
 0x434   : > { %s1146_s15 = smov %s968_s24  ;;  %19 = sbr.rel (!%p17_p7) target bundleno = 6 (0x6), region = 81 }
 0x43b   :  { %565 = vsyncpa [#allocation3], 1 }
 0x43c   :  { %567 = vsyncpa [#allocation3 + $0x1], 1 }
 0x43d   :  { %568 = vsyncpa [#allocation6], 1 }
 0x43e   :  { %569 = vsyncpa [#allocation4], 1 }
 0x43f   :  { %571 = vsyncpa [#allocation4 + $0x1], 1 }

</bundles_post_ra>
